<compile_context>
chip_gen: v6e
topology: v6e:2x2x1
jax: 0.10.0
libtpu: 0.0.40
codegen_flags: <defaults>
</compile_context>

<pallas_src>
import numpy as np
import jax
import jax.numpy as jnp
from jax.experimental import pallas as pl
from jax.experimental.pallas import tpu as pltpu

_LANE = 128
_MIB = 1024 * 1024


def _adaptive_avg_pool_matrix(n_in, n_out):
    """P[i, j] = weight of input position j in output bin i (PyTorch AdaptiveAvgPool1d)."""
    P = np.zeros((n_out, n_in), dtype=np.float32)
    for i in range(n_out):
        s = (i * n_in) // n_out
        e = -(-((i + 1) * n_in) // n_out)  # ceil
        P[i, s:e] = 1.0 / (e - s)
    return P


def _round_up(n, m):
    return -(-n // m) * m


def _tpu_hints():
    """(native MXU tile, min pipelined grid steps). Conservative defaults on failure."""
    mxu_tile, min_steps = 128, 2
    try:
        kind = jax.devices()[0].device_kind.lower()
        if ("v6" in kind) or ("v7" in kind) or ("7x" in kind):
            mxu_tile = 256
        if ("v7" in kind) or ("7x" in kind):
            min_steps = 4          # 2 TensorCores/chip -> keep >= 2 steps per TC
    except Exception:
        pass
    return mxu_tile, min_steps


def _vmem_step_bytes(bt, c_high, c_low, h, h_pad, n_low,
                     in_itemsize, cdt_itemsize, out_itemsize):
    """Upper-bound per-grid-step VMEM: streamed blocks x2, resident blocks x2, temporaries."""
    r_h, r_l = bt * c_high, bt * c_low
    lane = lambda n: _round_up(n, _LANE)
    sub = lambda n: _round_up(n, 8)
    streamed = 2 * (sub(r_h) * lane(h) * in_itemsize            # fms_high rows
                    + sub(r_l) * lane(n_low) * in_itemsize      # fms_low rows
                    + sub(r_h) * h_pad * out_itemsize)          # output rows
    resident = 2 * (sub(n_low) * h_pad * cdt_itemsize           # adaptive-pool matrix
                    + sub(r_l) * lane(r_h) * 4                  # conv1x1 block (f32)
                    + 3 * sub(r_l) * lane(r_l) * cdt_itemsize   # conv3x3 tap stack
                    + sub(r_h) * lane(r_l) * cdt_itemsize       # reduction conv block
                    + (2 * sub(r_l) + sub(r_h)) * _LANE * 4)    # shift columns (lane-padded)
    temps = (3 * sub(r_l) * h_pad * cdt_itemsize                # xc, x_prev, x_next
             + 2 * sub(r_l) * h_pad * 4                         # x, mask/att (f32)
             + sub(r_h) * h_pad * 4)                            # red (f32)
    return streamed + resident + temps


def _choose_batch_tile(b, c_high, c_low, h, h_pad, n_low,
                       in_itemsize, cdt_itemsize, out_itemsize,
                       mxu_tile, min_steps, vmem_target):
    """Pick how many batch elements are packed into one grid step (rows = bt*channels)."""
    # dtype-aware sublane packing: 8 rows for f32, 16 for bf16, 32 for int8/fp8
    sub_align = max(32 // cdt_itemsize, 32 // in_itemsize)
    hard, good = [], []
    for bt in range(1, b + 1):
        if b % bt:
            continue
        r_h, r_l = bt * c_high, bt * c_low
        # Hard BlockSpec legality: second-minor block dims multiple of 8 or the full dim.
        if not ((r_h % 8 == 0 and r_l % 8 == 0) or bt == b):
            continue
        hard.append(bt)
        # Soft preferences (performance):
        if bt > 1 and bt * max(c_high, c_low) > mxu_tile:
            continue   # block-diagonal zeros must stay inside ONE native MXU tile
        if bt > 1 and b // bt < min_steps:
            continue   # keep the software pipeline (and both v7x TCs) engaged
        if not ((r_h % sub_align == 0 and r_l % sub_align == 0) or bt == b):
            continue   # avoid packed-row relayouts for sub-32-bit dtypes
        if _vmem_step_bytes(bt, c_high, c_low, h, h_pad, n_low,
                            in_itemsize, cdt_itemsize, out_itemsize) > vmem_target:
            continue
        good.append(bt)
    if good:
        return max(good)
    # Fallback: smallest legal tile (may still exceed the target; see length-tiling TODO).
    return min(hard)


def _make_gca_kernel(h, h_pad, compute_dtype):
    cdt = jnp.dtype(compute_dtype)

    def kernel(high_ref, low_ref, p_ref, w1_ref, w3_ref, wr_ref,
               sh_shift_ref, sl_shift_ref, sr_shift_ref, out_ref):
        # --- global average pool over length: XLU cross-lane reduce (MXU stays free),
        #     f32 accumulation regardless of the input dtype ---
        gp = jnp.sum(high_ref[...].astype(jnp.float32), axis=-1, keepdims=True) * (1.0 / h)

        # --- conv1x1 (c_high -> c_low) with BN scale folded into the block-diagonal
        #     weight, + BN shift + ReLU.  Tiny N=1 matvec, kept in f32. ---
        g = jnp.dot(w1_ref[...], gp, preferred_element_type=jnp.float32) + sh_shift_ref[...]
        g = jnp.maximum(g, 0.0)                                            # (r_l, 1)

        # --- adaptive average pool of fms_low to (padded) length h_pad: one 2D matmul.
        #     Pool-matrix columns >= h are zero, so pad columns of x are exactly 0. ---
        x = jnp.dot(low_ref[...].astype(cdt), p_ref[...],
                    preferred_element_type=jnp.float32)                    # (r_l, h_pad) f32
        xc = x.astype(cdt)                                                 # single cast, reused 3x

        # --- conv3x3 (padding=1, no bias): three accumulating matmuls against resident
        #     taps.  With length padding the zero pad columns double as the conv's edge
        #     padding, so no iota/where edge masks are needed. ---
        if h_pad > h:
            x_prev = pltpu.roll(xc, shift=1, axis=1)             # col 0     <- pad col (== 0)
            x_next = pltpu.roll(xc, shift=h_pad - 1, axis=1)     # col h - 1 <- pad col (== 0)
        else:  # h already a multiple of 128: explicit edge masking
            col = jax.lax.broadcasted_iota(jnp.int32, xc.shape, 1)
            zero = jnp.zeros_like(xc)
            x_prev = jnp.where(col == 0, zero, pltpu.roll(xc, shift=1, axis=1))
            x_next = jnp.where(col == h - 1, zero, pltpu.roll(xc, shift=h - 1, axis=1))

        mask = jnp.dot(w3_ref[0], x_prev, preferred_element_type=jnp.float32)
        mask = mask + jnp.dot(w3_ref[1], xc, preferred_element_type=jnp.float32)
        mask = mask + jnp.dot(w3_ref[2], x_next, preferred_element_type=jnp.float32)
        mask = mask + sl_shift_ref[...]                                    # (r_l, h_pad)

        # --- attention gating with the per-(batch, channel) global vector (lane bcast) ---
        att = mask * g

        # --- conv_reduction (c_low -> c_high) + BN shift + ReLU (f32 epilogue, optional
        #     narrow output dtype to cut writeback traffic) ---
        red = jnp.dot(wr_ref[...], att.astype(cdt), preferred_element_type=jnp.float32)
        out_ref[...] = jnp.maximum(red + sr_shift_ref[...], 0.0).astype(out_ref.dtype)

    return kernel


def gca_forward(fms_high, fms_low, params, *,
                compute_dtype=jnp.bfloat16, out_dtype=None):
    """GCA forward pass.

    compute_dtype: operand dtype of the large MXU matmuls.  bf16 is recommended on all
      TPU generations (incl. v5e); accumulation and the BN/ReLU epilogue stay in f32.
      Use jnp.float32 for strict-accuracy paths.
    out_dtype: output dtype (defaults to the input dtype); bf16 halves writeback traffic.
    """
    b, c_high, h = fms_high.shape
    b2, c_low, n_low = fms_low.shape
    assert b == b2
    eps = 1e-5
    cdt = jnp.dtype(compute_dtype)
    idt = jnp.dtype(fms_high.dtype)
    odt = jnp.dtype(out_dtype) if out_dtype is not None else idt

    # Lane-dense length for everything downstream of the adaptive pool.
    h_pad = _round_up(h, _LANE)

    def bn_fold(gamma, beta, mean, var):
        scale = gamma / jnp.sqrt(var + eps)
        shift = beta - mean * scale
        return scale.astype(jnp.float32), shift.astype(jnp.float32)

    sh_scale, sh_shift = bn_fold(*params["bn_high"])   # (c_low,)
    sl_scale, sl_shift = bn_fold(*params["bn_low"])    # (c_low,)
    sr_scale, sr_shift = bn_fold(*params["bn_red"])    # (c_high,)

    # Fold BN scales into the conv weights.
    w1s = sh_scale[:, None] * params["w1"]             # (c_low, c_high)
    w3s = sl_scale[:, None, None] * params["w3"]       # (c_low, c_low, 3)
    wrs = sr_scale[:, None] * params["wr"]             # (c_high, c_low)

    # Generation-aware batch tiling with a full VMEM budget (fits v7x's 64 MiB/TC).
    mxu_tile, min_steps = _tpu_hints()
    vmem_target = 40 * _MIB
    bt = _choose_batch_tile(b, c_high, c_low, h, h_pad, n_low,
                            idt.itemsize, cdt.itemsize, odt.itemsize,
                            mxu_tile, min_steps, vmem_target)
    grid = (b // bt,)
    r_h, r_l = bt * c_high, bt * c_low

    # Block-diagonal per-tile weights (kron with I_bt).  bt is capped so bt*channels stays
    # within ONE native MXU tile, so the block-diagonal zeros live in MXU padding; once
    # channels reach the MXU tile, bt degenerates to 1 and these are the plain weights.
    eye = jnp.eye(bt, dtype=jnp.float32)
    w1_blk = jnp.kron(eye, w1s)                                               # (r_l, r_h) f32
    w3_blk = jnp.stack([jnp.kron(eye, w3s[:, :, k]) for k in range(3)],
                       axis=0).astype(cdt)                                    # (3, r_l, r_l)
    wr_blk = jnp.kron(eye, wrs).astype(cdt)                                   # (r_h, r_l)

    # TODO(synk): the three shift columns could be folded into the matmuls as bias columns;
    # kept separate since the VPU adds are not the binding slot for this kernel.
    sh_shift_rows = jnp.tile(sh_shift, bt)[:, None]                           # (r_l, 1)
    sl_shift_rows = jnp.tile(sl_shift, bt)[:, None]                           # (r_l, 1)
    sr_shift_rows = jnp.tile(sr_shift, bt)[:, None]                           # (r_h, 1)

    # Adaptive-pool matrix, pre-transposed to (n_low, h) and zero-padded to h_pad columns
    # (free: built on the host).  Note: with bf16 compute the 1/(end-start) pool weights
    # are rounded to bf16 -- only the accumulation is f32, not the operands.
    p_t = np.zeros((n_low, h_pad), dtype=np.float32)
    p_t[:, :h] = _adaptive_avg_pool_matrix(n_low, h).T
    p_pad = jnp.asarray(p_t, dtype=cdt)

    # Activations flattened to (batch*channel, length) rows.  No host-side cast or padding
    # (that would be an extra full HBM read+write pass on a memory-bound kernel); the
    # kernel casts matmul operands internally.
    high2 = fms_high.reshape(b * c_high, h)
    low2 = fms_low.reshape(b * c_low, n_low)

    def resident(shape):
        # Constant index_map -> block is fetched once and stays resident across grid steps.
        return pl.BlockSpec(shape, lambda i: (0,) * len(shape))

    est = _vmem_step_bytes(bt, c_high, c_low, h, h_pad, n_low,
                           idt.itemsize, cdt.itemsize, odt.itemsize)
    # Generous headroom above the estimate, clamped under v7x's 64 MiB/TC physical VMEM.
    vmem_limit = int(min(max(est * 3 // 2, 32 * _MIB), 56 * _MIB))

    out2 = pl.pallas_call(
        _make_gca_kernel(h, h_pad, cdt),
        out_shape=jax.ShapeDtypeStruct((b * c_high, h_pad), odt),
        grid=grid,
        in_specs=[
            pl.BlockSpec((r_h, h), lambda i: (i, 0)),        # fms_high rows (GAP input)
            pl.BlockSpec((r_l, n_low), lambda i: (i, 0)),    # fms_low rows
            resident((n_low, h_pad)),                        # adaptive-pool matrix (padded cols)
            resident((r_l, r_h)),                            # conv1x1 (BN-scaled, block-diag)
            resident((3, r_l, r_l)),                         # conv3x3 taps (BN-scaled)
            resident((r_h, r_l)),                            # reduction conv (BN-scaled)
            resident((r_l, 1)),                              # bn_high shift
            resident((r_l, 1)),                              # bn_low shift
            resident((r_h, 1)),                              # bn_reduction shift
        ],
        out_specs=pl.BlockSpec((r_h, h_pad), lambda i: (i, 0)),
        compiler_params=pltpu.CompilerParams(
            # Batch-tile axis is embarrassingly parallel -> sharded across 2 TCs on v7x.
            dimension_semantics=("parallel",),
            vmem_limit_bytes=vmem_limit,
        ),
    )(high2, low2, p_pad, w1_blk, w3_blk, wr_blk,
      sh_shift_rows, sl_shift_rows, sr_shift_rows)

    if h_pad > h:
        out2 = out2[:, :h]
    return out2.reshape(b, c_high, h)


def gca_reference(fms_high, fms_low, params):
    """Plain-JAX reference (uses lax.conv for the 3x3 conv) to cross-check the kernel."""
    eps = 1e-5

    def bn(x, p):
        gamma, beta, mean, var = p
        return ((x - mean[None, :, None]) / jnp.sqrt(var[None, :, None] + eps)
                * gamma[None, :, None] + beta[None, :, None])

    gp = jnp.mean(fms_high, axis=2, keepdims=True)
    g = jnp.einsum('oc,bcl->bol', params["w1"], gp)
    g = jax.nn.relu(bn(g, params["bn_high"]))

    P = jnp.asarray(_adaptive_avg_pool_matrix(fms_low.shape[2], fms_high.shape[2]))
    low = jnp.einsum('bcn,hn->bch', fms_low, P)
    mask = jax.lax.conv_general_dilated(
        low, params["w3"], window_strides=(1,), padding=((1, 1),),
        dimension_numbers=('NCH', 'OIH', 'NCH'))
    mask = bn(mask, params["bn_low"])
    att = mask * g
    red = jnp.einsum('oc,bcl->bol', params["wr"], att)
    return jax.nn.relu(bn(red, params["bn_red"]))


if __name__ == "__main__":
    def bn_params(key, c):
        kg, kb, km, kv = jax.random.split(key, 4)
        gamma = 1.0 + 0.1 * jax.random.normal(kg, (c,), jnp.float32)
        beta = 0.1 * jax.random.normal(kb, (c,), jnp.float32)
        mean = 0.1 * jax.random.normal(km, (c,), jnp.float32)
        var = jnp.exp(0.1 * jax.random.normal(kv, (c,), jnp.float32))
        return (gamma, beta, mean, var)

    def make_case(key, b, c_high, c_low, h, n_low):
        ks = jax.random.split(key, 8)
        fms_high = jax.random.normal(ks[0], (b, c_high, h), jnp.float32)
        fms_low = jax.random.normal(ks[1], (b, c_low, n_low), jnp.float32)
        params = {
            "w1": 0.2 * jax.random.normal(ks[2], (c_low, c_high), jnp.float32),
            "w3": 0.2 * jax.random.normal(ks[3], (c_low, c_low, 3), jnp.float32),
            "wr": 0.2 * jax.random.normal(ks[4], (c_high, c_low), jnp.float32),
            "bn_high": bn_params(ks[5], c_low),
            "bn_low": bn_params(ks[6], c_low),
            "bn_red": bn_params(ks[7], c_high),
        }
        return fms_high, fms_low, params

    key = jax.random.PRNGKey(0)
    k1, k2 = jax.random.split(key)

    # Case 1: length not a multiple of 128 -> padded, lane-dense output path.
    fh, fl, prm = make_case(k1, b=4, c_high=16, c_low=8, h=16, n_low=24)
    ref = gca_reference(fh, fl, prm)

    out = gca_forward(fh, fl, prm, compute_dtype=jnp.float32)
    jax.block_until_ready(out)
    np.testing.assert_allclose(np.asarray(out), np.asarray(ref), rtol=1e-4, atol=1e-4)

    # bf16 MXU operands + bf16 output; f32 accumulation and epilogue -> looser tolerance.
    out_bf16 = gca_forward(fh, fl, prm, compute_dtype=jnp.bfloat16, out_dtype=jnp.bfloat16)
    jax.block_until_ready(out_bf16)
    np.testing.assert_allclose(np.asarray(out_bf16.astype(jnp.float32)), np.asarray(ref),
                               rtol=5e-2, atol=5e-2)

    # Case 2: length already a multiple of 128 -> unpadded, explicit edge-mask path.
    fh2, fl2, prm2 = make_case(k2, b=2, c_high=8, c_low=8, h=128, n_low=256)
    ref2 = gca_reference(fh2, fl2, prm2)
    out2 = gca_forward(fh2, fl2, prm2, compute_dtype=jnp.float32)
    jax.block_until_ready(out2)
    np.testing.assert_allclose(np.asarray(out2), np.asarray(ref2), rtol=1e-4, atol=1e-4)

    print("KERNEL_OK")
</pallas_src>

<mosaic_0001>
module attributes {stable_mosaic.version = 11 : i64} {
  func.func @kernel(%arg0: i32, %arg1: memref<32x16xf32, #tpu.memory_space<vmem>>, %arg2: memref<16x24xf32, #tpu.memory_space<vmem>>, %arg3: memref<24x128xf32, #tpu.memory_space<vmem>>, %arg4: memref<16x32xf32, #tpu.memory_space<vmem>>, %arg5: memref<3x16x16xf32, #tpu.memory_space<vmem>>, %arg6: memref<32x16xf32, #tpu.memory_space<vmem>>, %arg7: memref<16x1xf32, #tpu.memory_space<vmem>>, %arg8: memref<16x1xf32, #tpu.memory_space<vmem>>, %arg9: memref<32x1xf32, #tpu.memory_space<vmem>>, %arg10: memref<32x128xf32, #tpu.memory_space<vmem>>) attributes {dimension_semantics = [#tpu.dimension_semantics<parallel>], iteration_bounds = array<i64: 2>, scalar_prefetch = 0 : i64, scratch_operands = 0 : i64, tpu.core_type = #tpu.core_type<tc>, window_params = [{transform_indices = @transform_0, window_bounds = array<i64: 32, 16>}, {transform_indices = @transform_1, window_bounds = array<i64: 16, 24>}, {pipeline_mode = #tpu.pipeline_mode<synchronous>, transform_indices = @transform_2, window_bounds = array<i64: 24, 128>}, {pipeline_mode = #tpu.pipeline_mode<synchronous>, transform_indices = @transform_3, window_bounds = array<i64: 16, 32>}, {pipeline_mode = #tpu.pipeline_mode<synchronous>, transform_indices = @transform_4, window_bounds = array<i64: 3, 16, 16>}, {pipeline_mode = #tpu.pipeline_mode<synchronous>, transform_indices = @transform_5, window_bounds = array<i64: 32, 16>}, {pipeline_mode = #tpu.pipeline_mode<synchronous>, transform_indices = @transform_6, window_bounds = array<i64: 16, 1>}, {pipeline_mode = #tpu.pipeline_mode<synchronous>, transform_indices = @transform_7, window_bounds = array<i64: 16, 1>}, {pipeline_mode = #tpu.pipeline_mode<synchronous>, transform_indices = @transform_8, window_bounds = array<i64: 32, 1>}, {transform_indices = @transform_9, window_bounds = array<i64: 32, 128>}]} {
    %c0 = arith.constant 0 : index
    %c0_0 = arith.constant 0 : index
    %0 = vector.load %arg1[%c0, %c0_0] : memref<32x16xf32, #tpu.memory_space<vmem>>, vector<32x16xf32>
    %cst = arith.constant dense<0.000000e+00> : vector<32xf32>
    %1 = vector.multi_reduction <add>, %0, %cst [1] : vector<32x16xf32> to vector<32xf32>
    %2 = vector.shape_cast %1 : vector<32xf32> to vector<32x1xf32>
    %cst_1 = arith.constant 6.250000e-02 : f32
    %3 = vector.broadcast %cst_1 : f32 to vector<32x1xf32>
    %4 = arith.mulf %2, %3 : vector<32x1xf32>
    %c0_2 = arith.constant 0 : index
    %c0_3 = arith.constant 0 : index
    %5 = vector.load %arg4[%c0_2, %c0_3] : memref<16x32xf32, #tpu.memory_space<vmem>>, vector<16x32xf32>
    %cst_4 = arith.constant dense<0.000000e+00> : vector<16x1xf32>
    %6 = tpu.matmul %5, %4, %cst_4 {dimension_numbers = #tpu.dot_dimension_numbers<[1], [0], [0], [1], [0, 0, 1, 1], [], []>} : vector<16x32xf32>, vector<32x1xf32>, vector<16x1xf32> -> vector<16x1xf32>
    %c0_5 = arith.constant 0 : index
    %c0_6 = arith.constant 0 : index
    %7 = vector.load %arg7[%c0_5, %c0_6] : memref<16x1xf32, #tpu.memory_space<vmem>>, vector<16x1xf32>
    %8 = arith.addf %6, %7 : vector<16x1xf32>
    %cst_7 = arith.constant 0.000000e+00 : f32
    %9 = vector.broadcast %cst_7 : f32 to vector<16x1xf32>
    %10 = arith.maximumf %8, %9 : vector<16x1xf32>
    %c0_8 = arith.constant 0 : index
    %c0_9 = arith.constant 0 : index
    %11 = vector.load %arg2[%c0_8, %c0_9] : memref<16x24xf32, #tpu.memory_space<vmem>>, vector<16x24xf32>
    %c0_10 = arith.constant 0 : index
    %c0_11 = arith.constant 0 : index
    %12 = vector.load %arg3[%c0_10, %c0_11] : memref<24x128xf32, #tpu.memory_space<vmem>>, vector<24x128xf32>
    %cst_12 = arith.constant dense<0.000000e+00> : vector<16x128xf32>
    %13 = tpu.matmul %11, %12, %cst_12 {dimension_numbers = #tpu.dot_dimension_numbers<[1], [0], [0], [1], [0, 0, 1, 1], [], []>} : vector<16x24xf32>, vector<24x128xf32>, vector<16x128xf32> -> vector<16x128xf32>
    %c1_i32 = arith.constant 1 : i32
    %14 = tpu.dynamic_rotate %13 by %c1_i32 dim 1 : vector<16x128xf32>, i32 -> vector<16x128xf32>
    %c127_i32 = arith.constant 127 : i32
    %15 = tpu.dynamic_rotate %13 by %c127_i32 dim 1 : vector<16x128xf32>, i32 -> vector<16x128xf32>
    %c0_13 = arith.constant 0 : index
    %c0_14 = arith.constant 0 : index
    %c0_15 = arith.constant 0 : index
    %16 = vector.load %arg5[%c0_13, %c0_14, %c0_15] : memref<3x16x16xf32, #tpu.memory_space<vmem>>, vector<1x16x16xf32>
    %17 = vector.shape_cast %16 : vector<1x16x16xf32> to vector<16x16xf32>
    %cst_16 = arith.constant dense<0.000000e+00> : vector<16x128xf32>
    %18 = tpu.matmul %17, %14, %cst_16 {dimension_numbers = #tpu.dot_dimension_numbers<[1], [0], [0], [1], [0, 0, 1, 1], [], []>} : vector<16x16xf32>, vector<16x128xf32>, vector<16x128xf32> -> vector<16x128xf32>
    %c1 = arith.constant 1 : index
    %c0_17 = arith.constant 0 : index
    %c0_18 = arith.constant 0 : index
    %19 = vector.load %arg5[%c1, %c0_17, %c0_18] : memref<3x16x16xf32, #tpu.memory_space<vmem>>, vector<1x16x16xf32>
    %20 = vector.shape_cast %19 : vector<1x16x16xf32> to vector<16x16xf32>
    %cst_19 = arith.constant dense<0.000000e+00> : vector<16x128xf32>
    %21 = tpu.matmul %20, %13, %cst_19 {dimension_numbers = #tpu.dot_dimension_numbers<[1], [0], [0], [1], [0, 0, 1, 1], [], []>} : vector<16x16xf32>, vector<16x128xf32>, vector<16x128xf32> -> vector<16x128xf32>
    %22 = arith.addf %18, %21 : vector<16x128xf32>
    %c2 = arith.constant 2 : index
    %c0_20 = arith.constant 0 : index
    %c0_21 = arith.constant 0 : index
    %23 = vector.load %arg5[%c2, %c0_20, %c0_21] : memref<3x16x16xf32, #tpu.memory_space<vmem>>, vector<1x16x16xf32>
    %24 = vector.shape_cast %23 : vector<1x16x16xf32> to vector<16x16xf32>
    %cst_22 = arith.constant dense<0.000000e+00> : vector<16x128xf32>
    %25 = tpu.matmul %24, %15, %cst_22 {dimension_numbers = #tpu.dot_dimension_numbers<[1], [0], [0], [1], [0, 0, 1, 1], [], []>} : vector<16x16xf32>, vector<16x128xf32>, vector<16x128xf32> -> vector<16x128xf32>
    %26 = arith.addf %22, %25 : vector<16x128xf32>
    %c0_23 = arith.constant 0 : index
    %c0_24 = arith.constant 0 : index
    %27 = vector.load %arg8[%c0_23, %c0_24] : memref<16x1xf32, #tpu.memory_space<vmem>>, vector<16x1xf32>
    %28 = vector.broadcast %27 : vector<16x1xf32> to vector<16x128xf32>
    %29 = arith.addf %26, %28 : vector<16x128xf32>
    %30 = vector.broadcast %10 : vector<16x1xf32> to vector<16x128xf32>
    %31 = arith.mulf %29, %30 : vector<16x128xf32>
    %c0_25 = arith.constant 0 : index
    %c0_26 = arith.constant 0 : index
    %32 = vector.load %arg6[%c0_25, %c0_26] : memref<32x16xf32, #tpu.memory_space<vmem>>, vector<32x16xf32>
    %cst_27 = arith.constant dense<0.000000e+00> : vector<32x128xf32>
    %33 = tpu.matmul %32, %31, %cst_27 {dimension_numbers = #tpu.dot_dimension_numbers<[1], [0], [0], [1], [0, 0, 1, 1], [], []>} : vector<32x16xf32>, vector<16x128xf32>, vector<32x128xf32> -> vector<32x128xf32>
    %c0_28 = arith.constant 0 : index
    %c0_29 = arith.constant 0 : index
    %34 = vector.load %arg9[%c0_28, %c0_29] : memref<32x1xf32, #tpu.memory_space<vmem>>, vector<32x1xf32>
    %35 = vector.broadcast %34 : vector<32x1xf32> to vector<32x128xf32>
    %36 = arith.addf %33, %35 : vector<32x128xf32>
    %cst_30 = arith.constant 0.000000e+00 : f32
    %37 = vector.broadcast %cst_30 : f32 to vector<32x128xf32>
    %38 = arith.maximumf %36, %37 : vector<32x128xf32>
    %c0_31 = arith.constant 0 : index
    %c0_32 = arith.constant 0 : index
    %39 = vector.load %arg10[%c0_31, %c0_32] : memref<32x128xf32, #tpu.memory_space<vmem>>, vector<32x128xf32>
    tpu.vector_store %arg10[%c0_31, %c0_32], %38 {strides = array<i32>} : memref<32x128xf32, #tpu.memory_space<vmem>>, vector<32x128xf32>,
    return
  }
  func.func @transform_0(%arg0: i32) -> (i32, i32) {
    %c0_i32 = arith.constant 0 : i32
    %c0_i32_0 = arith.constant 0 : i32
    return %arg0, %c0_i32 : i32, i32
  }
  func.func @transform_1(%arg0: i32) -> (i32, i32) {
    %c0_i32 = arith.constant 0 : i32
    %c0_i32_0 = arith.constant 0 : i32
    return %arg0, %c0_i32 : i32, i32
  }
  func.func @transform_2(%arg0: i32) -> (i32, i32) {
    %c0_i32 = arith.constant 0 : i32
    %c0_i32_0 = arith.constant 0 : i32
    %c0_i32_1 = arith.constant 0 : i32
    return %c0_i32, %c0_i32_0 : i32, i32
  }
  func.func @transform_3(%arg0: i32) -> (i32, i32) {
    %c0_i32 = arith.constant 0 : i32
    %c0_i32_0 = arith.constant 0 : i32
    %c0_i32_1 = arith.constant 0 : i32
    return %c0_i32, %c0_i32_0 : i32, i32
  }
  func.func @transform_4(%arg0: i32) -> (i32, i32, i32) {
    %c0_i32 = arith.constant 0 : i32
    %c0_i32_0 = arith.constant 0 : i32
    %c0_i32_1 = arith.constant 0 : i32
    %c0_i32_2 = arith.constant 0 : i32
    return %c0_i32, %c0_i32_0, %c0_i32_1 : i32, i32, i32
  }
  func.func @transform_5(%arg0: i32) -> (i32, i32) {
    %c0_i32 = arith.constant 0 : i32
    %c0_i32_0 = arith.constant 0 : i32
    %c0_i32_1 = arith.constant 0 : i32
    return %c0_i32, %c0_i32_0 : i32, i32
  }
  func.func @transform_6(%arg0: i32) -> (i32, i32) {
    %c0_i32 = arith.constant 0 : i32
    %c0_i32_0 = arith.constant 0 : i32
    %c0_i32_1 = arith.constant 0 : i32
    return %c0_i32, %c0_i32_0 : i32, i32
  }
  func.func @transform_7(%arg0: i32) -> (i32, i32) {
    %c0_i32 = arith.constant 0 : i32
    %c0_i32_0 = arith.constant 0 : i32
    %c0_i32_1 = arith.constant 0 : i32
    return %c0_i32, %c0_i32_0 : i32, i32
  }
  func.func @transform_8(%arg0: i32) -> (i32, i32) {
    %c0_i32 = arith.constant 0 : i32
    %c0_i32_0 = arith.constant 0 : i32
    %c0_i32_1 = arith.constant 0 : i32
    return %c0_i32, %c0_i32_0 : i32, i32
  }
  func.func @transform_9(%arg0: i32) -> (i32, i32) {
    %c0_i32 = arith.constant 0 : i32
    %c0_i32_0 = arith.constant 0 : i32
    return %arg0, %c0_i32 : i32, i32
  }
}

</mosaic_0001>

<bundles_post_ra>
// kernel: tpu_custom_call.1
= control target key start
LH: loop header
LB: loop body
LE: loop exit
PB: predicated region body
PF: predicated region fallthrough
CT: control target
= control target key end

     0   :  { %14 = vsyncpa [#allocation3], 0  ;;  %s1527_s0 = inlined_call_operand.vmem [shape: f32[64,16], index: 0, kind: input, shape index: {}]   ;;  %s1528_s1 = inlined_call_operand.vmem [shape: f32[32,24], index: 1, kind: input, shape index: {}]   ;;  %s1529_s2 = inlined_call_operand.vmem [shape: f32[24,128], index: 2, kind: input, shape index: {}]   ;;  %s1530_s3 = inlined_call_operand.vmem [shape: f32[16,32], index: 3, kind: input, shape index: {}]   ;;  %s1531_s4 = inlined_call_operand.vmem [shape: f32[3,16,16], index: 4, kind: input, shape index: {}]   ;;  %s1532_s5 = inlined_call_operand.vmem [shape: f32[32,16], index: 5, kind: input, shape index: {}]   ;;  %s1533_s6 = inlined_call_operand.vmem [shape: f32[16,1], index: 6, kind: input, shape index: {}]   ;;  %s1534_s7 = inlined_call_operand.vmem [shape: f32[16,1], index: 7, kind: input, shape index: {}]   ;;  %s1535_s8 = inlined_call_operand.vmem [shape: f32[32,1], index: 8, kind: input, shape index: {}]   ;;  %s1536_s9 = inlined_call_operand.hbm [shape: f32[64,128], index: 9, kind: output, shape index: {}]  }
   0x1   :  { %16 = vsyncpa [#allocation3 + $0x1], 0  ;;  %s1337_s30 = smov 0   ;;  %s1339_s10 = smov 0  }
   0x2   :  { %s1341_s11 = smov 0   ;;  %s1343_s12 = smov 0  }
   0x3 LB: > { %s1358_s13 = sadd.s32 4294967295, %s1279_s12   ;;  %s1060_s14 = sadd.s32 4294967294, %s1279_s12   ;;  %s1279_s12 = sphi %s1343_s12, %s1542_s12   ;;  %s1275_s11 = sphi %s1341_s11, %s1541_s11   ;;  %s1271_s10 = sphi %s1339_s10, %s1540_s10   ;;  %s1267_s30 = sphi %s1337_s30, %s1539_s30  }
   0x4   : > { %s1362_s15 = sadd.s32 1, %s1279_s12   ;;  %s228_s16 = sadd.s32 1, %s1275_s11 }
   0x5   : > { %s225_s17 = ssub.s32 %s1279_s12, %s1362_s15  ;;  %p238_p0 = scmp.ne.s32.totalorder %s1275_s11, %s1271_s10 }
   0x6   : > { %p226_p1 = scmp.eq.s32.totalorder %s225_s17, 0  ;;  %p239_p2 = scmp.eq.s32.totalorder %s1358_s13, 1 }
   0x7   : > { %p244_p3 = scmp.ne.s32.totalorder %s1271_s10, %s1267_s30  ;;  %p245_p4 = scmp.eq.s32.totalorder %s1060_s14, 1 }
   0x8   : > { %s1373_s18 = scalar_select %p226_p1, %s1275_s11, %s228_s16  }
   0x9   : > { %p1375_p5 = por %p239_p2, %p238_p0  ;;  %p1379_p6 = por %p245_p4, %p244_p3 }
   0xa   : > { %p1063_p7 = scmp.ge.s32.totalorder %s1279_s12, 1  ;;  %p302_p8 = scmp.lt.s32.totalorder %s1279_s12, 3 }
   0xc   : > { %p303_p9 = pnand %p1063_p7, %p302_p8 }
   0xd   : > { %s1067_s25 = sshll.u32 (!%p303_p9), %s1358_s13, 1  ;;  %s1065_s26 = sshll.u32 (!%p303_p9), %s1358_s13, 2 }
   0xe   : > { %306 = sbr.rel (%p303_p9) target bundleno = 765 (0x2fd), region = 56  ;;  %p350_p10 = scmp.lt.s32.totalorder (!%p303_p9), %s1067_s25, 3 }
   0xf   : > { %p344_p11 = scmp.lt.s32.totalorder (!%p303_p9), %s1065_s26, 7  ;;  %s1282_s16 = smov (!%p303_p9), 1  }
  0x10   : > { %s1092_s23 = sshll.u32 (!%p303_p9), %s1358_s13, 9  ;;  %s1284_s28 = smov (!%p303_p9), [#allocation2]  }
  0x13   : > { %v469_v0 = vld [vmem:[%s1529_s2 + $0x10] sm:$0xff]  ;;  %v468_v1 = vld [vmem:[%s1529_s2 + $0x8] sm:$0xff]  ;;  %v467_v2 = vld [vmem:[%s1529_s2] sm:$0xff]  ;;  %s1544_s25 = smov (!%p350_p10, %s1067_s25), 3  ;;  %s1546_s26 = smov (!%p344_p11, %s1065_s26), 7  ;;  %vm470_vm0 = vcmask 195584  }
  0x14   : > { %1133 = vmatprep.subr.mxu1 %v469_v0  ;;  %s1068_s29 = sshll.u32 %s1544_s25, 3  ;;  %s1066_s21 = sshll.u32 %s1546_s26, 3  ;;  %vm360_vm1 = vcmask 130048   ;;  %v377_v13 = vld [vmem:[%s1530_s3] sm:$0xff]  ;;  %vm381_vm2 = vcmask 261120   ;;  %v1073_v14 = vld [vmem:[%s1531_s4 + $0x10] sm:$0xff] }
  0x15   : > { %1134 = vmatpush3.msra.mxu1 %v469_v0  ;;  %s353_s17 = scalar_lea.vmem %s1528_s1, %s1068_s29  ;;  %s347_s24 = scalar_lea.vmem %s1527_s0, %s1066_s21  ;;  %1130 = vmatprep.mubr.msk.f32.mxu0 %vm381_vm2, %v377_v13  ;;  %v378_v23 = vld [vmem:[%s1530_s3 + $0x8] sm:$0xff]  ;;  %v1281_v25 = vmov 0   ;;  %v1074_v27 = vld [vmem:[%s1531_s4 + $0x18] sm:$0xff]  ;;  %v560_v28 = vld [vmem:[%s1531_s4] sm:$0xff] }
  0x16   : > { %1135 = vmatprep.subr.mxu1 %v468_v1  ;;  %v465_v3 = vld [vmem:[%s353_s17] sm:$0xff]  ;;  %v466_v4 = vld [vmem:[%s353_s17 + $0x8] sm:$0xff]  ;;  %v359_v5 = vld [vmem:[%s347_s24 + $0x18] sm:$0xff]  ;;  %1218 = vset.pattern.permute.xlu1 %v1281_v25  ;;  %s1283_s17 = smov 127   ;;  %s1485_s26 = scalar_lea.hbm %s1536_s9, %s1092_s23 }
  0x17   : > { %1136 = vmatpush3.msra.mxu1 %v468_v1  ;;  %1139 = vmatprep.mubr.msk.f32.mxu1 %vm470_vm0, %v465_v3  ;;  %v358_v6 = vld [vmem:[%s347_s24 + $0x10] sm:$0xff]  ;;  %v357_v7 = vld [vmem:[%s347_s24 + $0x8] sm:$0xff]  ;;  %v370_v8 = vsel %vm360_vm1, %v359_v5, 0.0  ;;  %v356_v10 = vld [vmem:[%s347_s24] sm:$0xff]  ;;  %s1223_s29 = sshll.u32 %s1284_s28, 4  ;;  %s1224_s29 = int_to_ptr.vmem [resolvable:$false] %s1223_s29 }
  0x18   : > { %1137 = vmatprep.subr.mxu1 %v467_v2  ;;  %v364_v9 = vsel %vm360_vm1, %v357_v7, 0.0  ;;  %371 = vadd.xlane.f32.xlu0 %v370_v8  ;;  %v367_v11 = vsel %vm360_vm1, %v358_v6, 0.0  ;;  %v361_v12 = vsel %vm360_vm1, %v356_v10, 0.0  ;;  %v813_v29 = vld [vmem:[%s1534_s7] sm:$0xff]  ;;  %v814_v30 = vld [vmem:[%s1534_s7 + $0x8] sm:$0xff]  ;;  %v845_v48 = vld [vmem:[%s1535_s8 + $0x10] sm:$0xff] }
  0x19   : > { %1138 = vmatpush3.msra.mxu1 %v467_v2  ;;  %365 = vadd.xlane.f32.xlu1 %v364_v9  ;;  %v561_v34 = vld [vmem:[%s1531_s4 + $0x8] sm:$0xff]  ;;  %v1079_v35 = vld [vmem:[%s1531_s4 + $0x20] sm:$0xff]  ;;  %v846_v49 = vld [vmem:[%s1535_s8 + $0x18] sm:$0xff]  ;;  %s1225_s14 = scalar_lea.vmem %s1224_s29, 1024 }
  0x1a   : > { %1140 = vmatmul.mubr.msk.f32.vlgmr.msra.gmra.mxu1 %vm470_vm0, %v466_v4  ;;  %1217 = vset.pattern.permute.xlu0 %v1281_v25  ;;  %v1080_v37 = vld [vmem:[%s1531_s4 + $0x28] sm:$0xff]  ;;  %v379_v40 = vld [vmem:[%s1533_s6] sm:$0xff]  ;;  %v841_v6 = vld [vmem:[%s1532_s5 + $0x10] sm:$0xff] }
  0x1b   : > { %1146 = vmatprep.mubr.msk.f32.mxu1 %vm360_vm1, %v1073_v14  ;;  %v380_v38 = vld [vmem:[%s1533_s6 + $0x8] sm:$0xff]  ;;  %v843_v46 = vld [vmem:[%s1535_s8] sm:$0xff]  ;;  %v842_v7 = vld [vmem:[%s1532_s5 + $0x18] sm:$0xff] }
  0x1c   : > { %368 = vadd.xlane.f32.xlu0 %v367_v11  ;;  %v844_v47 = vld [vmem:[%s1535_s8 + $0x8] sm:$0xff]  ;;  %v839_v50 = vld [vmem:[%s1532_s5] sm:$0xff] }
  0x1d   : > { %362 = vadd.xlane.f32.xlu1 %v361_v12  ;;  %v840_v5 = vld [vmem:[%s1532_s5 + $0x8] sm:$0xff] }
  0xa1   : > { %v372_v15 = vpop.xlane.xlu0 %371 }
  0xa2   : > { %v366_v16 = vpop.xlane.xlu1 %365  ;;  %v376_v17 = vmul.f32 0.0625, %v372_v15 }
  0xa3   : > { %v374_v21 = vmul.f32 0.0625, %v366_v16 }
  0xa4   : > { %1122 = vmatprep.subr.mxu0 %v376_v17 }
  0xa5   : > { %v369_v18 = vpop.xlane.xlu0 %368  ;;  %1123 = vmatpush3.msra.mxu0 %v376_v17 }
  0xa6   : > { %v363_v19 = vpop.xlane.xlu1 %362  ;;  %v375_v20 = vmul.f32 0.0625, %v369_v18 }
  0xa7   : > { %v373_v22 = vmul.f32 0.0625, %v363_v19 }
  0xa8   : > { %1124 = vmatprep.subr.mxu0 %v375_v20 }
  0xa9   : > { %1125 = vmatpush3.msra.mxu0 %v375_v20 }
  0xaa   : > { %1126 = vmatprep.subr.mxu0 %v374_v21 }
  0xab   : > { %1127 = vmatpush3.msra.mxu0 %v374_v21 }
  0xac   : > { %1128 = vmatprep.subr.mxu0 %v373_v22 }
  0xad   : > { %1129 = vmatpush3.msra.mxu0 %v373_v22 }
  0xae   : > { %1131 = vmatmul.mubr.msk.f32.vlgmr.msra.gmra.mxu0 %vm381_vm2, %v378_v23 }
  0xaf   : > { %1167 = vmatprep.mubr.msk.f32.mxu0 %vm360_vm1, %v839_v50 }
  0xda   : > { %v1141_v24 = vpop.f32.mrf.mxu1 }
  0xdb   : > { %1142 = vmatprep.subr.mxu1 %v1141_v24  ;;  %554 = vrot.lane.b32.xlu0 %v1141_v24, %s1282_s16 }
  0xdc   : > { %558 = vrot.lane.b32.xlu1 %v1141_v24, %s1283_s17  ;;  %v543_v26 = vpop.f32.mrf.mxu1  ;;  %1143 = vmatpush3.msra.mxu1 %v1141_v24 }
  0xdd   : > { %1144 = vmatprep.subr.mxu1 %v543_v26 }
  0xde   : > { %1145 = vmatpush3.msra.mxu1 %v543_v26 }
  0xdf   : > { %1147 = vmatmul.mubr.msk.f32.vlgmr.msra.gmra.mxu1 %vm360_vm1, %v1074_v27  ;;  %822 = vperm.xlu0 %1217, %v814_v30  }
  0xe0   : > { %552 = vrot.lane.b32.xlu1 %v543_v26, %s1282_s16  ;;  %1153 = vmatprep.mubr.msk.f32.mxu1 %vm360_vm1, %v560_v28  ;;  %s340_s16 = sand.u32 1, %s1271_s10  }
  0xe1   : > { %s1487_s27 = scalar_lea.sflag [#allocation3], %s340_s16 }
  0xe4   : > { %556 = vrot.lane.b32.xlu1 %v543_v26, %s1283_s17  ;;  %s1064_s17 = sshll.u32 %s340_s16, 5 }
  0xe5   : > { %s342_s21 = scalar_lea.vmem [#allocation2], %s1064_s17 }
  0xe6   : > { %s986_s22 = sshll.u32 %s342_s21, 4  ;;  %s1480_s22 = int_to_ptr.vmem [resolvable:$true] %s986_s22 }
  0xe7   : > { %s1219_s13 = scalar_lea.vmem %s1480_s22, 512  ;;  %p1226_p1 = scmp.lt.s32.totalorder %s1480_s22, %s1224_s29 }
  0xe8   : > { %817 = vperm.xlu1 %1218, %v813_v29   ;;  %p1220_p12 = scmp.ne.s32.totalorder %s1480_s22, %s1219_s13  ;;  %p1227_p2 = scmp.lt.s32.totalorder %s1225_s14, %s1219_s13 }
  0xea   : > { %p1221_p13 = pnand %p1220_p12, %p1375_p5  ;;  %p1228_p3 = por %p1227_p2, %p1226_p1 }
  0xec   : > { %p1222_p0 = pneg %p1221_p13 }
  0xee   : > { %p1229_p4 = pnand %p1228_p3, %p1222_p0 }
 0x14d   : > { %v555_v31 = vpop.permute.xlu0 %554 }
 0x14e   : > { %v559_v32 = vpop.permute.xlu1 %558  ;;  %1149 = vmatprep.subr.mxu1 %v555_v31 }
 0x14f   : > { %1150 = vmatpush3.msra.mxu1 %v555_v31 }
 0x152   : > { %v553_v33 = vpop.permute.xlu1 %552 }
 0x153   : > { %1151 = vmatprep.subr.mxu1 %v553_v33 }
 0x154   : > { %1152 = vmatpush3.msra.mxu1 %v553_v33 }
 0x155   : > { %1154 = vmatmul.mubr.msk.f32.vlgmr.msra.gmra.mxu1 %vm360_vm1, %v561_v34  ;;  %1156 = vmatprep.subr.mxu1 %v559_v32 }
 0x156   : > { %1157 = vmatpush3.msra.mxu1 %v559_v32  ;;  %v557_v36 = vpop.permute.xlu1 %556  ;;  %1160 = vmatprep.mubr.msk.f32.mxu1 %vm360_vm1, %v1079_v35 }
 0x157   : > { %1158 = vmatprep.subr.mxu1 %v557_v36 }
 0x158   : > { %1159 = vmatpush3.msra.mxu1 %v557_v36 }
 0x159   : > { %1161 = vmatmul.mubr.msk.f32.vlgmr.msra.gmra.mxu1 %vm360_vm1, %v1080_v37 }
 0x15a   : > { %v823_v57 = vpop.permute.xlu0 %822 }
 0x163   : > { %v818_v54 = vpop.permute.xlu1 %817 }
 0x16e   : > { %v1132_v39 = vpop.f32.mrf.mxu0 }
 0x16f   : > { %v460_v41 = vadd.f32 %v1132_v39, %v380_v38 }
 0x170   : > { %v454_v42 = vpop.f32.mrf.mxu0 }
 0x171   : > { %v464_v43 = vmax.f32 %v460_v41, 0.0  ;;  %v455_v44 = vadd.f32 %v454_v42, %v379_v40 }
 0x173   : > { %v463_v45 = vmax.f32 %v455_v44, 0.0  ;;  %834 = vperm.xlu1 %1218, %v464_v43  }
 0x175   : > { %829 = vperm.xlu0 %1217, %v463_v45  }
 0x177   : > { %849 = vperm.xlu1 %1218, %v843_v46  }
 0x179   : > { %854 = vperm.xlu0 %1217, %v844_v47  }
 0x17b   : > { %859 = vperm.xlu1 %1218, %v845_v48  }
 0x17d   : > { %864 = vperm.xlu0 %1217, %v846_v49  }
 0x19f   : > { %v1148_v51 = vpop.f32.mrf.mxu1 }
 0x1a1   : > { %v637_v52 = vpop.f32.mrf.mxu1 }
 0x1ee   : > { %v835_v0 = vpop.permute.xlu1 %834 }
 0x1f0   : > { %v830_v3 = vpop.permute.xlu0 %829 }
 0x1f2   : > { %v850_v9 = vpop.permute.xlu1 %849 }
 0x1f4   : > { %v855_v8 = vpop.permute.xlu0 %854 }
 0x1f6   : > { %v860_v19 = vpop.permute.xlu1 %859 }
 0x1f8   : > { %v865_v15 = vpop.permute.xlu0 %864 }
 0x215   : > { %v1155_v53 = vpop.f32.mrf.mxu1 }
 0x216   : > { %v724_v56 = vadd.f32 %v1155_v53, %v1148_v51 }
 0x217   : > { %v718_v55 = vpop.f32.mrf.mxu1 }
 0x218   : > { %v719_v59 = vadd.f32 %v718_v55, %v637_v52 }
 0x219   : > { %v1162_v58 = vpop.f32.mrf.mxu1 }
 0x21a   : > { %v812_v60 = vadd.f32 %v1162_v58, %v724_v56 }
 0x21b   : > { %v802_v61 = vpop.f32.mrf.mxu1 }
 0x21c   : > { %v826_v62 = vadd.f32 %v823_v57, %v812_v60  ;;  %v811_v63 = vadd.f32 %v802_v61, %v719_v59 }
 0x21e   : > { %v825_v1 = vadd.f32 %v818_v54, %v811_v63  ;;  %v838_v2 = vmul.f32 %v835_v0, %v826_v62 }
 0x220   : > { %1163 = vmatprep.subr.mxu0 %v838_v2  ;;  %v837_v4 = vmul.f32 %v830_v3, %v825_v1 }
 0x221   : > { %1164 = vmatpush3.msra.mxu0 %v838_v2 }
 0x222   : > { %1165 = vmatprep.subr.mxu0 %v837_v4 }
 0x223   : > { %1166 = vmatpush3.msra.mxu0 %v837_v4 }
 0x224   : > { %1168 = vmatmul.mubr.msk.f32.vlgmr.msra.gmra.mxu0 %vm360_vm1, %v840_v5 }
 0x225   : > { %1170 = vmatprep.mubr.msk.f32.mxu0 %vm360_vm1, %v841_v6 }
 0x228   : > { %1171 = vmatmul.mubr.msk.f32.gmra.mxu0 %vm360_vm1, %v842_v7 }
 0x2e4   : > { %v1169_v10 = vpop.f32.mrf.mxu0 }
 0x2e5   : > { %v951_v11 = vadd.f32 %v1169_v10, %v855_v8 }
 0x2e6   : > { %v945_v12 = vpop.f32.mrf.mxu0 }
 0x2e7   : > { %v965_v13 = vmax.f32 %v951_v11, 0.0  ;;  %v946_v14 = vadd.f32 %v945_v12, %v850_v9 }
 0x2e8   : > { %v1172_v16 = vpop.f32.mrf.mxu0 }
 0x2e9   : > { %969 = vst [vmem:[%s342_s21 + $0x8] sm:$0xff] %v965_v13  ;;  %v964_v17 = vmax.f32 %v946_v14, 0.0  ;;  %v961_v18 = vadd.f32 %v1172_v16, %v865_v15 }
 0x2ea   : > { %v955_v20 = vpop.f32.mrf.mxu0 }
 0x2eb   : > { %968 = vst [vmem:[%s342_s21] sm:$0xff] %v964_v17  ;;  %v967_v21 = vmax.f32 %v961_v18, 0.0  ;;  %v956_v22 = vadd.f32 %v955_v20, %v860_v19 }
 0x2ed   : > { %971 = vst [vmem:[%s342_s21 + $0x18] sm:$0xff] %v967_v21  ;;  %v966_v23 = vmax.f32 %v956_v22, 0.0 }
 0x2ef   : > { %970 = vst [vmem:[%s342_s21 + $0x10] sm:$0xff] %v966_v23 }
 0x2f0   : > { %1232 = shalt.err (!%p1229_p4)
}
 0x2f1   : > { %s1233_s16 = scalar_lea.hbm %s1485_s26, 512  ;;  %s1237_s23 = scalar_lea.hbm %s1536_s9, 1024 }
 0x2f2   : > { %p1234_p7 = scmp.ne.s32.totalorder %s1485_s26, %s1233_s16  ;;  %p1238_p10 = scmp.lt.s32.totalorder %s1485_s26, %s1536_s9 }
 0x2f3   : > { %p1239_p11 = scmp.lt.s32.totalorder %s1237_s23, %s1233_s16 }
 0x2f4   : > { %p1235_p8 = pnand %p1234_p7, %p1375_p5 }
 0x2f5   : > { %p1240_p12 = por %p1239_p11, %p1238_p10 }
 0x2f6   : > { %p1236_p9 = pneg %p1235_p8 }
 0x2f8   : > { %p1241_p13 = pnand %p1240_p12, %p1236_p9 }
 0x2fa   : > { %1244 = shalt.err (!%p1241_p13)
}
 0x2fb   : > { %s1285_s13 = smov 128   ;;  %s1286_s28 = smov 8  }
 0x2fc   : > { %1173 = dma.vmem_to_hbm [thread:$0]  (%p1375_p5), %s1480_s22, 512, %s1485_s26, %s1487_s27, %s1285_s13, %s1285_s13, %s1286_s28  }
 0x2fd PF: > { %p1179_p0 = scmp.ge.s32.totalorder %s1279_s12, 2  ;;  %s1001_s29 = sand.u32 1, %s1267_s30  }
 0x2fe   : > { %s1002_s14 = scalar_lea.sflag [#allocation3], %s1001_s29 }
 0x2ff   : > { %p1176_p1 = pnand %p1179_p0, %p1379_p6 }
 0x301   : > { %p1177_p2 = pneg %p1176_p1 }
 0x303   : > { %1262 = dma.done.wait (%p1177_p2), %s1002_s14, 512  }
 0x304   : > { %1264 = vsyncadd (%p1177_p2), %s1002_s14, 4294966784  ;;  %p19_p3 = scmp.ge.s32.totalorder %s1362_s15, 4   ;;  %s1539_s30 = smov %s1271_s10 }
 0x305   : > { %s1540_s10 = smov %s1275_s11  ;;  %s1541_s11 = smov %s1373_s18 }
 0x306   : > { %s1542_s12 = smov %s1362_s15  ;;  %21 = sbr.rel (!%p19_p3) target bundleno = 3 (0x3), region = 96 }
 0x30b   :  { %1007 = vsyncpa [#allocation3], 1 }
 0x30c   :  { %1009 = vsyncpa [#allocation3 + $0x1], 1 }

</bundles_post_ra>
